<compile_context>
chip_gen: v7x
topology: tpu7x:2x2x1
jax: 0.10.0
libtpu: 0.0.40
codegen_flags: <defaults>
</compile_context>

<pallas_src>
from functools import partial

import jax
import jax.numpy as jnp
from jax import lax
from jax.experimental import pallas as pl
from jax.experimental.pallas import tpu as pltpu


def _round_up(x, m):
    return (x + m - 1) // m * m


def _focal_loss_kernel(logits_ref, targets_ref, out_ref, acc_ref, *,
                       alpha, gamma, n_valid, block_n, blocks_per_split,
                       needs_mask):
    i = pl.program_id(1)                                # reduction axis (inner)

    @pl.when(i == 0)
    def _init():
        acc_ref[0] = jnp.float32(0.0)

    x = logits_ref[...].astype(jnp.float32)             # (block_n, C), upcast in-kernel
    t = targets_ref[...]                                 # (block_n, 1) int32

    # Numerically-stable logsumexp over the class (lane) axis.
    m = jnp.max(x, axis=-1, keepdims=True)               # (block_n, 1)
    lse = m + jnp.log(jnp.sum(jnp.exp(x - m), axis=-1, keepdims=True))

    # Gather logits[i, target_i] via iota/one-hot compare (no dynamic gather on
    # TPU).  Assumes 0 <= target < C (out-of-range targets would silently give
    # tgt_logit = 0, where PyTorch cross_entropy errors out).
    col = lax.broadcasted_iota(jnp.int32, x.shape, 1)     # (block_n, C)
    tgt_logit = jnp.sum(jnp.where(col == t, x, 0.0), axis=-1, keepdims=True)

    ce = lse - tgt_logit                                  # per-sample CE, (block_n, 1)
    pt = jnp.exp(-ce)
    one_minus_pt = 1.0 - pt

    g = float(gamma)
    if g == 2.0:
        w = one_minus_pt * one_minus_pt                   # single VPU multiply
    elif g.is_integer() and g >= 0:
        gi = int(g)
        w = jnp.ones_like(one_minus_pt) if gi == 0 else one_minus_pt
        for _ in range(max(gi - 1, 0)):
            w = w * one_minus_pt
    else:
        # Non-integer gamma: clamp base so exp(g*log(base)) never sees a negative.
        w = jnp.power(jnp.maximum(one_minus_pt, 0.0), g)

    focal = alpha * w * ce                                # (block_n, 1)

    if needs_mask:
        # Only emitted when N was padded: mask rows with global index >= n_valid.
        gblk = pl.program_id(0) * blocks_per_split + i
        row = gblk * block_n + lax.broadcasted_iota(jnp.int32, focal.shape, 0)
        focal = jnp.where(row < n_valid, focal, 0.0)

    acc_ref[0] += jnp.sum(focal)

    @pl.when(i == pl.num_programs(1) - 1)
    def _finalize():
        # Per-core partial sum, broadcast into this core's private (8,128) block.
        out_ref[...] = jnp.full(out_ref.shape, acc_ref[0], dtype=jnp.float32)


def focal_loss(logits, targets, alpha=1.0, gamma=2.0,
               tile_bytes=2 * 1024 * 1024, num_splits=2):
    """Pallas implementation of FocalLoss.forward(inputs, targets)."""
    n, c = logits.shape
    itemsize = jnp.dtype(logits.dtype).itemsize

    # Sublane packing multiple for this dtype: 8 (f32), 16 (bf16), 32 (int8/fp8).
    sub = max(8, 32 // itemsize)

    # Per-row VMEM cost of one tile: the logits row plus the lane-padded
    # (block_n,1) -> (block_n,128) int32 targets row (512 B).
    row_bytes = c * itemsize + 128 * 4
    bn = max(sub, (tile_bytes // row_bytes) // sub * sub)
    block_n = int(min(bn, _round_up(n, sub)))

    # Split the row-blocks across TensorCores (v7x megacore); harmless serial
    # loop on single-TC chips.
    n_blocks = pl.cdiv(n, block_n)
    splits = num_splits if n_blocks >= num_splits else 1
    blocks_per_split = _round_up(n_blocks, splits) // splits
    n_pad = blocks_per_split * splits * block_n

    if n_pad != n:
        logits = jnp.pad(logits, ((0, n_pad - n), (0, 0)))
        targets = jnp.pad(targets, ((0, n_pad - n),))
    t2d = targets.astype(jnp.int32).reshape(n_pad, 1)     # glue: shape plumbing only

    # Generation-aware VMEM limit: size to the actual double-buffered need,
    # clamped to the chip's physical VMEM (v7x only has 64 MiB per TC).
    logits_blk = block_n * c * itemsize
    targets_blk = block_n * 128 * 4                       # lane-padded in VMEM
    need = 2 * (logits_blk + targets_blk) + 2 * (8 * 128 * 4) + (1 << 20)
    try:
        vmem_cap = int(pltpu.get_tpu_info().vmem_capacity_bytes)
    except Exception:
        vmem_cap = 64 * 1024 * 1024                       # conservative (v7x per-TC)
    vmem_limit = int(min(max(need, 16 * 1024 * 1024), int(vmem_cap * 0.75)))
    # TODO(synk): for vocab-scale C where even a single (sub, C) block overflows
    # VMEM, stream the class axis with an online (flash-style) logsumexp.

    bps = blocks_per_split
    grid = (splits, blocks_per_split)

    out = pl.pallas_call(
        partial(_focal_loss_kernel, alpha=float(alpha), gamma=float(gamma),
                n_valid=int(n), block_n=block_n, blocks_per_split=bps,
                needs_mask=(n_pad != n)),
        out_shape=jax.ShapeDtypeStruct((splits * 8, 128), jnp.float32),
        grid=grid,
        in_specs=[
            pl.BlockSpec((block_n, c), lambda ci, i: (ci * bps + i, 0)),  # logits
            pl.BlockSpec((block_n, 1), lambda ci, i: (ci * bps + i, 0)),  # targets
        ],
        # Each core owns a distinct lane-dense (8,128) output block -> no races.
        out_specs=pl.BlockSpec((8, 128), lambda ci, i: (ci, 0)),
        scratch_shapes=[pltpu.SMEM((1,), jnp.float32)],    # per-core running sum
        compiler_params=pltpu.CompilerParams(
            dimension_semantics=("parallel", "arbitrary"),
            vmem_limit_bytes=vmem_limit),
    )(logits, t2d)

    # Sum the per-core partials (row 0 of each (8,128) block) and take the mean
    # over the true (unpadded) N.
    return out[::8, 0].sum() / n


def _focal_loss_ref(logits, targets, alpha=1.0, gamma=2.0):
    """Pure-JAX reference (mirrors the PyTorch module)."""
    x = logits.astype(jnp.float32)
    lse = jax.scipy.special.logsumexp(x, axis=-1)
    tgt = jnp.take_along_axis(x, targets[:, None], axis=-1)[:, 0]
    ce = lse - tgt
    pt = jnp.exp(-ce)
    return jnp.mean(alpha * (1.0 - pt) ** gamma * ce)


if __name__ == "__main__":
    key = jax.random.PRNGKey(0)
    k1, k2, k3, k4, k5, k6 = jax.random.split(key, 6)

    # Small shapes consistent with a (batch, num_classes) classifier head.
    N, C = 8, 32
    logits = jax.random.normal(k1, (N, C), dtype=jnp.float32)
    targets = jax.random.randint(k2, (N,), 0, C, dtype=jnp.int32)

    loss = focal_loss(logits, targets, alpha=1.0, gamma=2.0)
    jax.block_until_ready(loss)
    ref = _focal_loss_ref(logits, targets, alpha=1.0, gamma=2.0)
    assert jnp.allclose(loss, ref, rtol=1e-5, atol=1e-5), (loss, ref)

    # Multi-block grid + dual-split (parallel axis) + padding/masking path:
    # N not a multiple of block_n, small tile_bytes to force several blocks.
    N2, C2 = 40, 128
    logits2 = jax.random.normal(k3, (N2, C2), dtype=jnp.float32)
    targets2 = jax.random.randint(k4, (N2,), 0, C2, dtype=jnp.int32)

    loss2 = focal_loss(logits2, targets2, alpha=0.5, gamma=2.0, tile_bytes=16 * 1024)
    jax.block_until_ready(loss2)
    ref2 = _focal_loss_ref(logits2, targets2, alpha=0.5, gamma=2.0)
    assert jnp.allclose(loss2, ref2, rtol=1e-5, atol=1e-5), (loss2, ref2)

    # bf16 input path: exercises the 16-row sublane alignment + in-kernel upcast.
    N3, C3 = 48, 256
    logits3 = jax.random.normal(k5, (N3, C3), dtype=jnp.float32).astype(jnp.bfloat16)
    targets3 = jax.random.randint(k6, (N3,), 0, C3, dtype=jnp.int32)

    loss3 = focal_loss(logits3, targets3, alpha=1.0, gamma=2.0, tile_bytes=32 * 1024)
    jax.block_until_ready(loss3)
    ref3 = _focal_loss_ref(logits3, targets3, alpha=1.0, gamma=2.0)
    assert jnp.allclose(loss3, ref3, rtol=1e-4, atol=1e-4), (loss3, ref3)

    print("KERNEL_OK")
</pallas_src>

<mosaic_0001>
module attributes {stable_mosaic.version = 11 : i64} {
  func.func @_focal_loss_kernel(%arg0: i32, %arg1: i32, %arg2: memref<8x32xf32, #tpu.memory_space<vmem>>, %arg3: memref<8x1xi32, #tpu.memory_space<vmem>>, %arg4: memref<8x128xf32, #tpu.memory_space<vmem>>, %arg5: memref<1xf32, #tpu.memory_space<smem>>) attributes {dimension_semantics = [#tpu.dimension_semantics<parallel>, #tpu.dimension_semantics<arbitrary>], iteration_bounds = array<i64: 1, 1>, scalar_prefetch = 0 : i64, scratch_operands = 1 : i64, tpu.core_type = #tpu.core_type<tc>, window_params = [{transform_indices = @transform_0, window_bounds = array<i64: 8, 32>}, {transform_indices = @transform_1, window_bounds = array<i64: 8, 1>}, {transform_indices = @transform_2, window_bounds = array<i64: 8, 128>}]} {
    %c0_i32 = arith.constant 0 : i32
    %0 = arith.cmpi eq, %arg1, %c0_i32 : i32
    %1 = arith.extui %0 : i1 to i32
    %c0_i32_0 = arith.constant 0 : i32
    %2 = arith.cmpi ne, %1, %c0_i32_0 : i32
    scf.if %2 {
      %cst_15 = arith.constant 0.000000e+00 : f32
      %c0_16 = arith.constant 0 : index
      %41 = memref.load %arg5[%c0_16] : memref<1xf32, #tpu.memory_space<smem>>
      memref.store %cst_15, %arg5[%c0_16] : memref<1xf32, #tpu.memory_space<smem>>
    } else {
    }
    %c0 = arith.constant 0 : index
    %c0_1 = arith.constant 0 : index
    %3 = vector.load %arg2[%c0, %c0_1] : memref<8x32xf32, #tpu.memory_space<vmem>>, vector<8x32xf32>
    %c0_2 = arith.constant 0 : index
    %c0_3 = arith.constant 0 : index
    %4 = vector.load %arg3[%c0_2, %c0_3] : memref<8x1xi32, #tpu.memory_space<vmem>>, vector<8x1xi32>
    %cst = arith.constant dense<0xFF800000> : vector<8xf32>
    %5 = vector.multi_reduction <maximumf>, %3, %cst [1] : vector<8x32xf32> to vector<8xf32>
    %6 = vector.shape_cast %5 : vector<8xf32> to vector<8x1xf32>
    %7 = vector.broadcast %6 : vector<8x1xf32> to vector<8x32xf32>
    %8 = arith.subf %3, %7 : vector<8x32xf32>
    %9 = math.exp %8 : vector<8x32xf32>
    %cst_4 = arith.constant dense<0.000000e+00> : vector<8xf32>
    %10 = vector.multi_reduction <add>, %9, %cst_4 [1] : vector<8x32xf32> to vector<8xf32>
    %11 = vector.shape_cast %10 : vector<8xf32> to vector<8x1xf32>
    %12 = math.log %11 : vector<8x1xf32>
    %13 = arith.addf %6, %12 : vector<8x1xf32>
    %14 = tpu.iota {dimensions = array<i32: 1>} : vector<8x32xi32>
    %15 = vector.broadcast %4 : vector<8x1xi32> to vector<8x32xi32>
    %16 = arith.cmpi eq, %14, %15 : vector<8x32xi32>
    %cst_5 = arith.constant 0.000000e+00 : f32
    %17 = vector.broadcast %cst_5 : f32 to vector<8x32xf32>
    %18 = arith.select %16, %3, %17 : vector<8x32xi1>, vector<8x32xf32>
    %cst_6 = arith.constant dense<0.000000e+00> : vector<8xf32>
    %19 = vector.multi_reduction <add>, %18, %cst_6 [1] : vector<8x32xf32> to vector<8xf32>
    %20 = vector.shape_cast %19 : vector<8xf32> to vector<8x1xf32>
    %21 = arith.subf %13, %20 : vector<8x1xf32>
    %cst_7 = arith.constant 0.000000e+00 : f32
    %22 = vector.broadcast %cst_7 : f32 to vector<8x1xf32>
    %23 = arith.subf %22, %21 : vector<8x1xf32>
    %24 = math.exp %23 : vector<8x1xf32>
    %cst_8 = arith.constant 1.000000e+00 : f32
    %25 = vector.broadcast %cst_8 : f32 to vector<8x1xf32>
    %26 = arith.subf %25, %24 : vector<8x1xf32>
    %27 = arith.mulf %26, %26 : vector<8x1xf32>
    %cst_9 = arith.constant 1.000000e+00 : f32
    %28 = vector.broadcast %cst_9 : f32 to vector<8x1xf32>
    %29 = arith.mulf %28, %27 : vector<8x1xf32>
    %30 = arith.mulf %29, %21 : vector<8x1xf32>
    %c0_10 = arith.constant 0 : index
    %31 = memref.load %arg5[%c0_10] : memref<1xf32, #tpu.memory_space<smem>>
    %32 = vector.shape_cast %30 : vector<8x1xf32> to vector<1x8x1xf32>
    %cst_11 = arith.constant dense<0.000000e+00> : vector<1xf32>
    %33 = vector.multi_reduction <add>, %32, %cst_11 [1, 2] : vector<1x8x1xf32> to vector<1xf32>
    %34 = vector.shape_cast %33 : vector<1xf32> to vector<1x1x1xf32>
    %35 = vector.extract %34[0, 0, 0] : f32 from vector<1x1x1xf32>
    %36 = arith.addf %31, %35 : f32
    %c0_12 = arith.constant 0 : index
    %37 = memref.load %arg5[%c0_12] : memref<1xf32, #tpu.memory_space<smem>>
    memref.store %36, %arg5[%c0_12] : memref<1xf32, #tpu.memory_space<smem>>
    %c0_i32_13 = arith.constant 0 : i32
    %38 = arith.cmpi eq, %arg1, %c0_i32_13 : i32
    %39 = arith.extui %38 : i1 to i32
    %c0_i32_14 = arith.constant 0 : i32
    %40 = arith.cmpi ne, %39, %c0_i32_14 : i32
    scf.if %40 {
      %c0_15 = arith.constant 0 : index
      %41 = memref.load %arg5[%c0_15] : memref<1xf32, #tpu.memory_space<smem>>
      %42 = vector.broadcast %41 : f32 to vector<8x128xf32>
      %c0_16 = arith.constant 0 : index
      %c0_17 = arith.constant 0 : index
      %43 = vector.load %arg4[%c0_16, %c0_17] : memref<8x128xf32, #tpu.memory_space<vmem>>, vector<8x128xf32>
      tpu.vector_store %arg4[%c0_16, %c0_17], %42 {strides = array<i32>} : memref<8x128xf32, #tpu.memory_space<vmem>>, vector<8x128xf32>,
    } else {
    }
    return
  }
  func.func @transform_0(%arg0: i32, %arg1: i32) -> (i32, i32) {
    %c1_i32 = arith.constant 1 : i32
    %0 = arith.muli %arg0, %c1_i32 : i32
    %1 = arith.addi %0, %arg1 : i32
    %c0_i32 = arith.constant 0 : i32
    %c0_i32_0 = arith.constant 0 : i32
    return %1, %c0_i32 : i32, i32
  }
  func.func @transform_1(%arg0: i32, %arg1: i32) -> (i32, i32) {
    %c1_i32 = arith.constant 1 : i32
    %0 = arith.muli %arg0, %c1_i32 : i32
    %1 = arith.addi %0, %arg1 : i32
    %c0_i32 = arith.constant 0 : i32
    %c0_i32_0 = arith.constant 0 : i32
    return %1, %c0_i32 : i32, i32
  }
  func.func @transform_2(%arg0: i32, %arg1: i32) -> (i32, i32) {
    %c0_i32 = arith.constant 0 : i32
    %c0_i32_0 = arith.constant 0 : i32
    return %arg0, %c0_i32 : i32, i32
  }
}

</mosaic_0001>

<bundles_post_ra>
// kernel: tpu_custom_call.1
= control target key start
LH: loop header
LB: loop body
LE: loop exit
PB: predicated region body
PF: predicated region fallthrough
CT: control target
= control target key end

     0   :  { %vm54_vm0 = vcmask 261120   ;;  %s204_s0 = inlined_call_operand.vmem [shape: f32[8,32], index: 0, kind: input, shape index: {}]   ;;  %s205_s1 = inlined_call_operand.vmem [shape: s32[8,1], index: 1, kind: input, shape index: {}]   ;;  %s206_s2 = inlined_call_operand.hbm [shape: f32[8,128], index: 2, kind: output, shape index: {}]  }
   0x1   :  { %v52_v0 = vld [vmem:[%s204_s0] sm:$0xff] }
   0x2   :  { %7 = vsyncpa [#allocation4], 0  ;;  %v55_v1 = vsel %vm54_vm0, %v52_v0, -inf  ;;  %v166_v2 = vmov 0   ;;  %v53_v3 = vld [vmem:[%s205_s1] sm:$0xff]  ;;  %v67_v7 = vlaneseq  ;;  %vm85_vm2 = vcmask 7168  }
   0x3   :  { %135 = vset.pattern.permute.xlu0 %v166_v2  ;;  %s167_s0 = smov [#allocation3]  }
   0x4   :  { %56 = vmax.xlane.f32.xlu0 %v55_v1  ;;  %v68_v8 = vand.u32 127, %v67_v7  ;;  %s111_s1 = sshll.u32 %s167_s0, 4  ;;  %s112_s1 = int_to_ptr.vmem [resolvable:$true] %s111_s1 }
   0x5   :  { %s142_s14 = scalar_lea.vmem %s112_s1, 128  ;;  %p147_p1 = scmp.lt.s32.totalorder %s112_s1, %s112_s1 }
   0x6   :  { %p143_p0 = scmp.ne.s32.totalorder %s112_s1, %s142_s14  ;;  %p148_p2 = scmp.lt.s32.totalorder %s142_s14, %s142_s14 }
   0x8   :  { %p149_p3 = por %p148_p2, %p147_p1 }
   0xa   :  { %p150_p4 = pnand %p149_p3, %p143_p0 }
  0x1a   :  { %70 = vperm.xlu0 %135, %v53_v3  }
  0x91   :  { %v57_v4 = vpop.xlane.xlu0 %56 }
  0x92   :  { %v58_v5 = vsub.f32 %v52_v0, %v57_v4 }
  0x94   :  { %v59_v6 = vmul.f32 1.442695, %v58_v5 }
  0x96   :  { %136 = vpow2.f32 %v59_v6 }
  0x99   :  { %v71_v9 = vpop.permute.xlu0 %70 }
  0x9a   :  { %vm72_vm1 = vcmp.eq.s32.totalorder %v68_v8, %v71_v9 }
  0x9b   :  { %v73_v11 = vsel %vm72_vm1, %v52_v0, 0.0 }
  0x9c   :  { %v74_v13 = vsel %vm54_vm0, %v73_v11, 0.0 }
  0xa0   :  { %v137_v10 = vpop.eup %136 }
  0xa1   :  { %v61_v12 = vsel %vm54_vm0, %v137_v10, 0.0 }
  0xa2   :  { %62 = vadd.xlane.f32.xlu1 %v61_v12 }
  0xa6   :  { %75 = vadd.xlane.f32.xlu1 %v74_v13 }
 0x12f   :  { %v63_v14 = vpop.xlane.xlu1 %62 }
 0x130   :  { %138 = vlog2.f32 %v63_v14 }
 0x133   :  { %v76_v17 = vpop.xlane.xlu1 %75 }
 0x13a   :  { %v139_v15 = vpop.eup %138 }
 0x13b   :  { %v65_v16 = vmul.f32 0.6931472, %v139_v15 }
 0x13d   :  { %v66_v18 = vadd.f32 %v65_v16, %v57_v4 }
 0x13f   :  { %v77_v19 = vsub.f32 %v66_v18, %v76_v17 }
 0x141   :  { %v78_v20 = vsub.f32 0.0, %v77_v19 }
 0x143   :  { %v79_v21 = vmul.f32 1.442695, %v78_v20 }
 0x145   :  { %140 = vpow2.f32 %v79_v21 }
 0x14f   :  { %v141_v22 = vpop.eup %140 }
 0x150   :  { %v81_v23 = vsub.f32 1.0, %v141_v22 }
 0x152   :  { %v82_v24 = vmul.f32 %v81_v23, %v81_v23 }
 0x154   :  { %v83_v25 = vmul.f32 %v82_v24, %v77_v19 }
 0x156   :  { %v86_v26 = vsel %vm85_vm2, %v83_v25, 0.0 }
 0x157   :  { %87 = vadd.xlane.f32.xlu1 %v86_v26 }
 0x1e4   :  { %v88_v27 = vpop.xlane.xlu1 %87 }
 0x1e5   :  { %v89_v28 = vrot.slane %v88_v27, 4 }
 0x1e7   :  { %v90_v29 = vadd.f32 %v89_v28, %v88_v27 }
 0x1e9   :  { %v91_v30 = vrot.slane %v90_v29, 2 }
 0x1eb   :  { %v92_v31 = vadd.f32 %v91_v30, %v90_v29 }
 0x1ed   :  { %v93_v32 = vrot.slane %v92_v31, 1 }
 0x1ef   :  { %v94_v33 = vadd.f32 %v93_v32, %v92_v31 }
 0x1f1   :  { %131 = vpush %v94_v33 }
 0x222   :  { %s132_s13 = spop %131 }
 0x223   :  { %v103_v34 = vstv %s132_s13 }
 0x224   :  { %104 = vst [vmem:[#allocation3] sm:$0xff] %v103_v34 }
 0x225   :  { %153 = shalt.err (!%p150_p4)
}
 0x226   :  { %s154_s17 = scalar_lea.hbm %s206_s2, 128 }
 0x227   :  { %p155_p5 = scmp.ne.s32.totalorder %s206_s2, %s154_s17  ;;  %p158_p6 = scmp.lt.u32.totalorder %s154_s17, %s206_s2 }
 0x229   :  { %p160_p7 = pnand %p158_p6, %p155_p5 }
 0x22b   :  { %163 = shalt.err (!%p160_p7)
}
 0x22c   :  { %114 = dma.vmem_to_hbm [thread:$0]  %s112_s1, 128, %s206_s2, [#allocation4]  }
 0x22d   :  { %164 = dma.done.wait [#allocation4], 128  }
 0x22e   :  { %165 = vsyncadd [#allocation4], 4294967168 }
 0x22f   :  { %118 = vsyncpa [#allocation4], 1 }

</bundles_post_ra>
